<compile_context>
chip_gen: v5e
topology: v5e:2x2
jax: 0.10.0
libtpu: 0.0.40
codegen_flags: <defaults>
</compile_context>

<pallas_src>
import functools
import math

import jax
import jax.numpy as jnp
from jax.experimental import pallas as pl
from jax.experimental.pallas import tpu as pltpu


# ----------------------------- Pallas kernel ------------------------------ #

def _rope_kernel(cos_ref, sin_ref, x_ref, o_ref, *, r2, d_head):
    """Rotate-half RoPE on one (TS, Hp, Dq) tile, Dq = pack * d_head.

    cos_ref/sin_ref: (TS, Dq) full-width tables:
        per head segment  cos = [cos, cos, 1...1],  sin = [-sin, sin, 0...0]
    so the passthrough tail (rotary_dim < headdim) is handled for free and the
    store is a single full-width, unmasked write.
    """
    x = x_ref[...]                          # (TS, Hp, Dq)
    cos = cos_ref[...][:, None, :]          # (TS, 1, Dq) -> broadcast over heads
    sin = sin_ref[...][:, None, :]
    dq = x.shape[-1]

    if dq == 2 * r2:
        # rotary_dim == headdim, no head packing: single half-rotation
        # (direction-agnostic since r2 == dq - r2).
        rot = pltpu.roll(x, shift=r2, axis=2)
    else:
        # General case (packed heads and/or rotary_dim < headdim):
        #   first half of each head segment needs x[l + r2]
        #   second half               needs x[l - r2]
        # pltpu.roll follows jnp.roll: roll(x, s)[l] == x[(l - s) % dq]
        x_fwd = pltpu.roll(x, shift=r2, axis=2)        # -> x[l - r2]
        x_bwd = pltpu.roll(x, shift=dq - r2, axis=2)   # -> x[l + r2]
        lane = jax.lax.broadcasted_iota(jnp.int32, (1, 1, dq), 2)
        first_half = (lane % d_head) < r2
        rot = jnp.where(first_half, x_bwd, x_fwd)

    # Tail positions: cos == 1, sin == 0 -> pure passthrough.
    o_ref[...] = x * cos + rot * sin


# ------------------------------ wrappers ----------------------------------- #

def _head_pack_factor(nheads: int, headdim: int) -> int:
    """Pack P heads per lane row so the last (lane) dim becomes a multiple of 128."""
    if headdim >= 128 or 128 % headdim != 0:
        return 1
    return math.gcd(nheads, 128 // headdim)


def _choose_seq_tile(seqlen: int, row_bytes: int,
                     target_bytes: int = 2 * 1024 * 1024) -> int:
    """Largest seq tile dividing seqlen that is a multiple of 8 (layout rule for the
    cos/sin blocks) and keeps one x block under target_bytes (fits double-buffered
    in+out well below the scoped-VMEM default on v5e/v6e/v7x)."""
    if seqlen * row_bytes <= target_bytes:
        return seqlen
    divisors = [t for t in range(8, seqlen + 1, 8) if seqlen % t == 0]
    if not divisors:
        return seqlen
    fitting = [t for t in divisors if t * row_bytes <= target_bytes]
    return max(fitting) if fitting else min(divisors)


def _build_full_width_tables(cos, sin, headdim, pack, dtype):
    """cos/sin: (S, r2) float32 -> full-width (S, pack*headdim) tables in `dtype`."""
    S, r2 = cos.shape
    tail = headdim - 2 * r2
    pieces_c = [cos, cos]
    pieces_s = [-sin, sin]
    if tail > 0:
        pieces_c.append(jnp.ones((S, tail), dtype=cos.dtype))
        pieces_s.append(jnp.zeros((S, tail), dtype=sin.dtype))
    cos_full = jnp.concatenate(pieces_c, axis=-1)
    sin_full = jnp.concatenate(pieces_s, axis=-1)
    if pack > 1:
        cos_full = jnp.tile(cos_full, (1, pack))
        sin_full = jnp.tile(sin_full, (1, pack))
    return cos_full.astype(dtype), sin_full.astype(dtype)


def _apply_rotary_slabs(x_packed, cos_tab, sin_tab, *, r2, d_head):
    """x_packed: (B, S, NS, Hp, Dq). Rotates slabs [0, n_rot) of axis 2 in place
    (output aliases the input, so untouched slabs -- e.g. v -- keep their bytes).
    cos_tab/sin_tab: (n_rot, S, Dq), one table per rotated slab."""
    B, S, NS, Hp, Dq = x_packed.shape
    n_rot = cos_tab.shape[0]
    assert n_rot <= NS and cos_tab.shape == (n_rot, S, Dq)

    row_bytes = Hp * Dq * x_packed.dtype.itemsize
    ts = _choose_seq_tile(S, row_bytes)
    grid = (S // ts, B, n_rot)

    kernel = functools.partial(_rope_kernel, r2=r2, d_head=d_head)
    return pl.pallas_call(
        kernel,
        out_shape=jax.ShapeDtypeStruct(x_packed.shape, x_packed.dtype),
        grid_spec=pltpu.PrefetchScalarGridSpec(
            num_scalar_prefetch=0,
            grid=grid,
            in_specs=[
                pl.BlockSpec((None, ts, Dq), lambda s, b, j: (j, s, 0)),
                pl.BlockSpec((None, ts, Dq), lambda s, b, j: (j, s, 0)),
                pl.BlockSpec((None, ts, None, Hp, Dq),
                             lambda s, b, j: (b, s, j, 0, 0)),
            ],
            out_specs=pl.BlockSpec((None, ts, None, Hp, Dq),
                                   lambda s, b, j: (b, s, j, 0, 0)),
        ),
        # In-place on the qkv/kv buffer: slabs never indexed by the grid (v) are
        # passed through without any extra HBM traffic.
        input_output_aliases={2: 0},
        compiler_params=pltpu.CompilerParams(
            dimension_semantics=("parallel", "parallel", "parallel")),
    )(cos_tab, sin_tab, x_packed)


# ------------------------ RotaryEmbedding (JAX side) ----------------------- #

class RotaryEmbeddingPallas:
    """JAX/Pallas port of flash_attn.layers.rotary.RotaryEmbedding (forward only).

    GPT-NeoX rotate-half style. Optional XPos scaling via scale_base.
    """

    def __init__(self, dim, base=10000.0, interleaved=False, scale_base=None,
                 pos_idx_in_fp32=True):
        self.dim = dim
        self.base = float(base)
        self.interleaved = interleaved
        self.scale_base = scale_base
        self.pos_idx_in_fp32 = pos_idx_in_fp32
        self.inv_freq = 1.0 / (self.base ** (
            jnp.arange(0, dim, 2, dtype=jnp.float32) / dim))
        if scale_base is not None:
            self.scale = (jnp.arange(0, dim, 2, dtype=jnp.float32)
                          + 0.4 * dim) / (1.4 * dim)
        else:
            self.scale = None
        # TODO(synk): interleaved=True (GPT-J even/odd pairing) is not implemented.
        assert not interleaved, "interleaved=True not supported"

    def _cos_sin(self, seqlen):
        # Trig (and XPos scale) in float32; cast to activation dtype happens once
        # when the full-width tables are assembled.
        if self.pos_idx_in_fp32:
            t = jnp.arange(seqlen, dtype=jnp.float32)
        else:
            t = jnp.arange(seqlen, dtype=self.inv_freq.dtype)
        freqs = jnp.outer(t, self.inv_freq)
        cos, sin = jnp.cos(freqs), jnp.sin(freqs)
        if self.scale is None:
            return cos, sin, cos, sin
        power = (jnp.arange(seqlen, dtype=jnp.float32)
                 - seqlen // 2) / self.scale_base
        scale = self.scale[None, :] ** power[:, None]
        return cos * scale, sin * scale, cos / scale, sin / scale

    def __call__(self, qkv, kv=None, seqlen_offset=0):
        seqlen = qkv.shape[1]
        dtype = qkv.dtype
        cos, sin, cos_k, sin_k = self._cos_sin(seqlen + seqlen_offset)
        cos, sin = cos[seqlen_offset:], sin[seqlen_offset:]
        cos_k, sin_k = cos_k[seqlen_offset:], sin_k[seqlen_offset:]
        r2 = cos.shape[-1]

        if kv is None:
            # qkv: (B, S, 3, H, D); rotate q (slab 0) and k (slab 1), v untouched.
            B, S, three, H, D = qkv.shape
            assert three == 3 and 2 * r2 <= D
            P = _head_pack_factor(H, D)
            Hp, Dq = H // P, P * D
            cq, sq = _build_full_width_tables(cos, sin, D, P, dtype)
            ck, sk = _build_full_width_tables(cos_k, sin_k, D, P, dtype)
            cos_tab = jnp.stack([cq, ck])          # slab 0 = q, slab 1 = k
            sin_tab = jnp.stack([sq, sk])
            out = _apply_rotary_slabs(qkv.reshape(B, S, 3, Hp, Dq),
                                      cos_tab, sin_tab, r2=r2, d_head=D)
            return out.reshape(B, S, 3, H, D)

        # qkv is q: (B, S, H, D); kv: (B, S, 2, H, D) -> rotate k (slab 0) only.
        B, S, H, D = qkv.shape
        assert 2 * r2 <= D
        P = _head_pack_factor(H, D)
        Hp, Dq = H // P, P * D
        cq, sq = _build_full_width_tables(cos, sin, D, P, dtype)
        q_out = _apply_rotary_slabs(qkv.reshape(B, S, 1, Hp, Dq),
                                    cq[None], sq[None], r2=r2, d_head=D)
        q_out = q_out.reshape(B, S, H, D)

        Bk, Sk, two, Hk, Dk = kv.shape
        assert two == 2 and 2 * r2 <= Dk
        Pk = _head_pack_factor(Hk, Dk)
        ck, sk = _build_full_width_tables(cos_k, sin_k, Dk, Pk, kv.dtype)
        kv_out = _apply_rotary_slabs(kv.reshape(Bk, Sk, 2, Hk // Pk, Pk * Dk),
                                     ck[None], sk[None], r2=r2, d_head=Dk)
        return q_out, kv_out.reshape(kv.shape)


# ------------------------------ reference ---------------------------------- #

def _rope_ref(x, cos, sin):
    # x: (B, S, H, D); cos/sin: (S, rotary_dim//2)
    r2 = cos.shape[-1]
    c = cos[:, None, :].astype(x.dtype)
    s = sin[:, None, :].astype(x.dtype)
    x1, x2 = x[..., :r2], x[..., r2:2 * r2]
    o1 = x1 * c - x2 * s
    o2 = x1 * s + x2 * c
    return jnp.concatenate([o1, o2, x[..., 2 * r2:]], axis=-1)


if __name__ == "__main__":
    key = jax.random.PRNGKey(0)
    k1, k2, k3 = jax.random.split(key, 3)

    # --- case 1: qkv path, rotary_dim == headdim, 4 heads packed onto 128 lanes ---
    B, S, H, D = 2, 8, 4, 32
    rope = RotaryEmbeddingPallas(dim=D, base=10000.0)
    qkv = jax.random.normal(k1, (B, S, 3, H, D), dtype=jnp.float32)
    out = jax.block_until_ready(rope(qkv))

    cos, sin, _, _ = rope._cos_sin(S)
    ref = jnp.stack([_rope_ref(qkv[:, :, 0], cos, sin),
                     _rope_ref(qkv[:, :, 1], cos, sin),
                     qkv[:, :, 2]], axis=2)
    assert out.shape == qkv.shape and out.dtype == qkv.dtype
    assert float(jnp.max(jnp.abs(out - ref))) < 1e-5

    # --- case 2: q + kv path, rotary_dim (16) < headdim (32): passthrough tail ---
    rope2 = RotaryEmbeddingPallas(dim=16, base=10000.0)
    q = jax.random.normal(k2, (B, S, H, D), dtype=jnp.float32)
    kv = jax.random.normal(k3, (B, S, 2, H, D), dtype=jnp.float32)
    q_out, kv_out = rope2(q, kv=kv)
    q_out = jax.block_until_ready(q_out)
    kv_out = jax.block_until_ready(kv_out)

    cos2, sin2, _, _ = rope2._cos_sin(S)
    q_ref = _rope_ref(q, cos2, sin2)
    kv_ref = jnp.stack([_rope_ref(kv[:, :, 0], cos2, sin2), kv[:, :, 1]], axis=2)
    assert float(jnp.max(jnp.abs(q_out - q_ref))) < 1e-5
    assert float(jnp.max(jnp.abs(kv_out - kv_ref))) < 1e-5

    print("KERNEL_OK")
</pallas_src>

<mosaic_0001>
module attributes {stable_mosaic.version = 11 : i64} {
  func.func @_rope_kernel(%arg0: i32, %arg1: i32, %arg2: i32, %arg3: memref<1x8x128xf32, #tpu.memory_space<vmem>>, %arg4: memref<1x8x128xf32, #tpu.memory_space<vmem>>, %arg5: memref<1x8x1x1x128xf32, #tpu.memory_space<vmem>>, %arg6: memref<1x8x1x1x128xf32, #tpu.memory_space<vmem>>) attributes {dimension_semantics = [#tpu.dimension_semantics<parallel>, #tpu.dimension_semantics<parallel>, #tpu.dimension_semantics<parallel>], iteration_bounds = array<i64: 1, 2, 2>, scalar_prefetch = 0 : i64, scratch_operands = 0 : i64, tpu.core_type = #tpu.core_type<tc>, window_params = [{transform_indices = @transform_0, window_bounds = array<i64: 1, 8, 128>}, {transform_indices = @transform_1, window_bounds = array<i64: 1, 8, 128>}, {transform_indices = @transform_2, window_bounds = array<i64: 1, 8, 1, 1, 128>}, {transform_indices = @transform_3, window_bounds = array<i64: 1, 8, 1, 1, 128>}]} {
    %c0 = arith.constant 0 : index
    %c0_0 = arith.constant 0 : index
    %c0_1 = arith.constant 0 : index
    %c0_2 = arith.constant 0 : index
    %c0_3 = arith.constant 0 : index
    %0 = vector.load %arg5[%c0, %c0_0, %c0_1, %c0_2, %c0_3] : memref<1x8x1x1x128xf32, #tpu.memory_space<vmem>>, vector<1x8x1x1x128xf32>
    %1 = vector.shape_cast %0 : vector<1x8x1x1x128xf32> to vector<8x1x128xf32>
    %c0_4 = arith.constant 0 : index
    %c0_5 = arith.constant 0 : index
    %c0_6 = arith.constant 0 : index
    %2 = vector.load %arg3[%c0_4, %c0_5, %c0_6] : memref<1x8x128xf32, #tpu.memory_space<vmem>>, vector<1x8x128xf32>
    %3 = vector.shape_cast %2 : vector<1x8x128xf32> to vector<8x128xf32>
    %4 = vector.shape_cast %3 : vector<8x128xf32> to vector<8x1x128xf32>
    %c0_7 = arith.constant 0 : index
    %c0_8 = arith.constant 0 : index
    %c0_9 = arith.constant 0 : index
    %5 = vector.load %arg4[%c0_7, %c0_8, %c0_9] : memref<1x8x128xf32, #tpu.memory_space<vmem>>, vector<1x8x128xf32>
    %6 = vector.shape_cast %5 : vector<1x8x128xf32> to vector<8x128xf32>
    %7 = vector.shape_cast %6 : vector<8x128xf32> to vector<8x1x128xf32>
    %c16_i32 = arith.constant 16 : i32
    %8 = tpu.dynamic_rotate %1 by %c16_i32 dim 2 : vector<8x1x128xf32>, i32 -> vector<8x1x128xf32>
    %c112_i32 = arith.constant 112 : i32
    %9 = tpu.dynamic_rotate %1 by %c112_i32 dim 2 : vector<8x1x128xf32>, i32 -> vector<8x1x128xf32>
    %10 = tpu.iota {dimensions = array<i32: 2>} : vector<1x1x128xi32>
    %c32_i32 = arith.constant 32 : i32
    %c0_i32 = arith.constant 0 : i32
    %11 = arith.cmpi eq, %c32_i32, %c0_i32 : i32
    %c1_i32 = arith.constant 1 : i32
    %12 = arith.select %11, %c1_i32, %c32_i32 : i32
    %13 = vector.broadcast %12 : i32 to vector<1x1x128xi32>
    %14 = arith.remsi %10, %13 : vector<1x1x128xi32>
    %c0_i32_10 = arith.constant 0 : i32
    %15 = vector.broadcast %c0_i32_10 : i32 to vector<1x1x128xi32>
    %16 = arith.cmpi ne, %14, %15 : vector<1x1x128xi32>
    %c0_i32_11 = arith.constant 0 : i32
    %17 = vector.broadcast %c0_i32_11 : i32 to vector<1x1x128xi32>
    %18 = arith.cmpi slt, %14, %17 : vector<1x1x128xi32>
    %c0_i32_12 = arith.constant 0 : i32
    %19 = arith.cmpi slt, %12, %c0_i32_12 : i32
    %20 = vector.broadcast %19 : i1 to vector<1x1x128xi1>
    %21 = vector.broadcast %20 : vector<1x1x128xi1> to vector<1x1x128xi1>
    %22 = arith.xori %18, %21 : vector<1x1x128xi1>
    %23 = arith.andi %22, %16 : vector<1x1x128xi1>
    %24 = vector.broadcast %12 : i32 to vector<1x1x128xi32>
    %25 = arith.addi %14, %24 : vector<1x1x128xi32>
    %26 = arith.select %23, %25, %14 : vector<1x1x128xi1>, vector<1x1x128xi32>
    %c16_i32_13 = arith.constant 16 : i32
    %27 = vector.broadcast %c16_i32_13 : i32 to vector<1x1x128xi32>
    %28 = arith.cmpi slt, %26, %27 : vector<1x1x128xi32>
    %29 = vector.shape_cast %28 : vector<1x1x128xi1> to vector<1x1x128xi1>
    %30 = vector.broadcast %29 : vector<1x1x128xi1> to vector<8x1x128xi1>
    %31 = arith.select %30, %9, %8 : vector<8x1x128xi1>, vector<8x1x128xf32>
    %32 = arith.mulf %1, %4 : vector<8x1x128xf32>
    %33 = arith.mulf %31, %7 : vector<8x1x128xf32>
    %34 = arith.addf %32, %33 : vector<8x1x128xf32>
    %c0_14 = arith.constant 0 : index
    %c0_15 = arith.constant 0 : index
    %c0_16 = arith.constant 0 : index
    %c0_17 = arith.constant 0 : index
    %c0_18 = arith.constant 0 : index
    %35 = vector.load %arg6[%c0_14, %c0_15, %c0_16, %c0_17, %c0_18] : memref<1x8x1x1x128xf32, #tpu.memory_space<vmem>>, vector<1x8x1x1x128xf32>
    %36 = vector.shape_cast %35 : vector<1x8x1x1x128xf32> to vector<8x1x128xf32>
    %37 = vector.shape_cast %34 : vector<8x1x128xf32> to vector<1x8x1x1x128xf32>
    tpu.vector_store %arg6[%c0_14, %c0_15, %c0_16, %c0_17, %c0_18], %37 {strides = array<i32>} : memref<1x8x1x1x128xf32, #tpu.memory_space<vmem>>, vector<1x8x1x1x128xf32>,
    return
  }
  func.func @transform_0(%arg0: i32, %arg1: i32, %arg2: i32) -> (i32, i32, i32) {
    %c0_i32 = arith.constant 0 : i32
    %c0_i32_0 = arith.constant 0 : i32
    return %arg2, %arg0, %c0_i32 : i32, i32, i32
  }
  func.func @transform_1(%arg0: i32, %arg1: i32, %arg2: i32) -> (i32, i32, i32) {
    %c0_i32 = arith.constant 0 : i32
    %c0_i32_0 = arith.constant 0 : i32
    return %arg2, %arg0, %c0_i32 : i32, i32, i32
  }
  func.func @transform_2(%arg0: i32, %arg1: i32, %arg2: i32) -> (i32, i32, i32, i32, i32) {
    %c0_i32 = arith.constant 0 : i32
    %c0_i32_0 = arith.constant 0 : i32
    %c0_i32_1 = arith.constant 0 : i32
    return %arg1, %arg0, %arg2, %c0_i32, %c0_i32_0 : i32, i32, i32, i32, i32
  }
  func.func @transform_3(%arg0: i32, %arg1: i32, %arg2: i32) -> (i32, i32, i32, i32, i32) {
    %c0_i32 = arith.constant 0 : i32
    %c0_i32_0 = arith.constant 0 : i32
    %c0_i32_1 = arith.constant 0 : i32
    return %arg1, %arg0, %arg2, %c0_i32, %c0_i32_0 : i32, i32, i32, i32, i32
  }
}

</mosaic_0001>

<bundles_post_ra>
// kernel: tpu_custom_call.1
= control target key start
LH: loop header
LB: loop body
LE: loop exit
PB: predicated region body
PF: predicated region fallthrough
CT: control target
= control target key end

     0   :  { %8 = vsyncpa [#allocation3], 0  ;;  %s1052_s0 = inlined_call_operand.vmem [shape: f32[2,8,128], index: 0, kind: input, shape index: {}]   ;;  %s1053_s1 = inlined_call_operand.vmem [shape: f32[2,8,128], index: 1, kind: input, shape index: {}]   ;;  %s1054_s2 = inlined_call_operand.hbm [shape: f32[2,8,3,1,128], index: 2, kind: input, shape index: {}, may-alias: {2,3}]   ;;  %s1055_s3 = inlined_call_operand.hbm [shape: f32[2,8,3,1,128], index: 3, kind: output, shape index: {}, may-alias: {2,3}]  }
   0x1   :  { %10 = vsyncpa [#allocation3 + $0x1], 0 }
   0x2   :  { %11 = vsyncpa [#allocation4], 0 }
   0x3   :  { %13 = vsyncpa [#allocation4 + $0x1], 0  ;;  %s807_s12 = smov 0   ;;  %s809_s13 = smov 0  }
   0x4   :  { %s811_s14 = smov 0   ;;  %s813_s15 = smov 0  }
   0x5   :  { %s815_s16 = smov 0   ;;  %s817_s17 = smov 0  }
   0x6   :  { %s819_s18 = smov 0   ;;  %s821_s19 = smov 0  }
   0x7 LB: > { %s550_s20 = sadd.s32 4294967295, %s778_s19   ;;  %s551_s21 = sadd.s32 4294967294, %s778_s19   ;;  %s778_s19 = sphi %s821_s19, %s19_s19   ;;  %s774_s18 = sphi %s819_s18, %s1074_s18   ;;  %s770_s17 = sphi %s817_s17, %s1073_s17   ;;  %s766_s16 = sphi %s815_s16, %s1072_s16   ;;  %s762_s15 = sphi %s813_s15, %s1071_s15   ;;  %s758_s14 = sphi %s811_s14, %s1070_s14   ;;  %s754_s13 = sphi %s809_s13, %s1069_s13   ;;  %s750_s12 = sphi %s807_s12, %s1068_s12  }
   0x8   : > { %s31_s22 = sadd.s32 1, %s770_s17  ;;  %s34_s23 = sadd.s32 1, %s774_s18 }
   0x9   : > { %p32_p0 = scmp.ge.s32.totalorder %s31_s22, 2  ;;  %s105_s24 = sadd.s32 1, %s758_s14 }
   0xa   : > { %p112_p1 = scmp.ne.s32.totalorder %s758_s14, %s754_s13  ;;  %p113_p2 = scmp.eq.s32.totalorder %s778_s19, 0 }
   0xb   : > { %s1076_s22 = smov (%p32_p0, %s31_s22), 0  ;;  %s1078_s23 = smov (!%p32_p0, %s34_s23), %s774_s18 }
   0xc   : > { %1058 = sst [smem:[#allocation8_spill]] %s1076_s22  ;;  %s101_s25 = ssub.s32 %s770_s17, %s1076_s22 }
   0xd   : > { %p860_p3 = por %p113_p2, %p112_p1  ;;  %p36_p4 = scmp.ge.s32.totalorder %s1078_s23, 2 }
   0xe   : > { %p118_p5 = scmp.ne.s32.totalorder %s754_s13, %s750_s12  ;;  %p119_p6 = scmp.eq.s32.totalorder %s550_s20, 0 }
   0xf   : > { %p146_p7 = scmp.eq.s32.totalorder %s550_s20, 3  ;;  %s1080_s23 = smov (%p36_p4, %s1078_s23), 0 }
  0x10   : > { %1060 = sst [smem:[#allocation9_spill]] %s1080_s23  ;;  %p868_p8 = por %p119_p6, %p118_p5 }
  0x11   : > { %p872_p9 = por %p146_p7, %p112_p1  ;;  %s98_s29 = ssub.s32 %s774_s18, %s1080_s23 }
  0x12   : > { %p152_p10 = scmp.eq.s32.totalorder %s551_s21, 3  ;;  %s102_s30 = sor.u32 %s101_s25, %s98_s29 }
  0x13   : > { %p103_p11 = scmp.eq.s32.totalorder %s102_s30, 0  ;;  %p577_p13 = scmp.lt.s32.totalorder %s778_s19, 4 }
  0x14   : > { %p878_p12 = por %p152_p10, %p118_p5  ;;  %s192_s5 = sand.u32 1, %s758_s14  }
  0x15   : > { %s885_s6 = scalar_select %p103_p11, %s758_s14, %s105_s24  }
  0x16   : > { %s554_s7 = sshll.u32 %s192_s5, 3  ;;  %s563_s8 = smul.u32 24, %s774_s18 }
  0x17   : > { %s196_s9 = scalar_lea.vmem [#allocation2], %s554_s7  ;;  %p570_p0 = pnand %p577_p13, %p860_p3 }
  0x18   : > { %s207_s10 = sshll.u32 %s196_s9, 4  ;;  %s203_s11 = sadd.s32 %s770_s17, %s563_s8  ;;  %s208_s10 = int_to_ptr.vmem [resolvable:$true] %s207_s10 }
  0x19   : > { %s204_s25 = scalar_lea.hbm %s1054_s2, %s203_s11  ;;  %p555_p1 = scmp.ge.s32.totalorder %s778_s19, 1 }
  0x1a   : > { %s205_s29 = sshll.u32 %s204_s25, 4  ;;  %s193_s30 = scalar_lea.sflag [#allocation3], %s192_s5  ;;  %s206_s29 = int_to_ptr.hbm [resolvable:$true] %s205_s29 }
  0x1b   : > { %s780_s23 = smov 48   ;;  %s781_s24 = smov 16  }
  0x1c   : > { %s782_s22 = smov 1   ;;  %p215_p2 = scmp.lt.s32.totalorder %s778_s19, 5 }
  0x1d   : > { %572 = dma.hbm_to_vmem [thread:$0]  (!%p570_p0), %s206_s29, 128, %s208_s10, %s193_s30, %s780_s23, %s781_s24, %s782_s22  }
  0x1e   : > { %p216_p4 = pnand %p555_p1, %p215_p2 }
  0x1f   : > { %s897_s26 = sand.u32 (!%p216_p4), 1, %s754_s13  }
  0x20   : > { %219 = sbr.rel (%p216_p4) target bundleno = 203 (0xcb), region = 32  ;;  %s556_s7 = sshll.u32 (!%p216_p4), %s897_s26, 3 }
  0x21   : > { %s222_s8 = scalar_lea.sflag (!%p216_p4), [#allocation3], %s897_s26  ;;  %s225_s9 = scalar_lea.vmem (!%p216_p4), [#allocation2], %s556_s7 }
  0x25   : > { %741 = dma.done.wait (%p868_p8), %s222_s8, 128  }
  0x26   : > { %743 = vsyncadd (%p868_p8), %s222_s8, 4294967168  ;;  %v907_v0 = vld [vmem:[%s225_s9 + $0x2] sm:$0x1]  ;;  %v279_v1 = vld [vmem:[%s225_s9] sm:$0x1]  ;;  %s783_s22 = smov 16   ;;  %v351_v10 = vlaneseq }
  0x27   : > { %323 = vrot.lane.b32.xlu1 %v907_v0, %s783_s22  ;;  %319 = vrot.lane.b32.xlu0 %v279_v1, %s783_s22  ;;  %v912_v2 = vld [vmem:[%s225_s9 + $0x4] sm:$0x1]  ;;  %v282_v3 = vld [vmem:[%s225_s9 + $0x3] sm:$0x1]  ;;  %s784_s23 = smov 112   ;;  %p263_p3 = scmp.lt.s32.totalorder %s762_s15, 1 }
  0x28   : > { %327 = vrot.lane.b32.xlu2 %v912_v2, %s783_s22  ;;  %v916_v4 = vld [vmem:[%s225_s9 + $0x1] sm:$0x1]  ;;  %v918_v5 = vld [vmem:[%s225_s9 + $0x5] sm:$0x1]  ;;  %v925_v6 = vld [vmem:[%s225_s9 + $0x7] sm:$0x1] }
  0x29   : > { %v285_v7 = vld [vmem:[%s225_s9 + $0x6] sm:$0x1]  ;;  %s264_s27 = scalar_select %p263_p3, %s762_s15, 1  ;;  %v352_v11 = vand.u32 127, %v351_v10 }
  0x2a   : > { %s962_s30 = scalar_lea.vmem [#allocation5], %s556_s7  ;;  %s564_s24 = smul.u32 24, %s766_s16 }
  0x2b   : > { %s558_s5 = sshll.u32 %s264_s27, 3  ;;  %v357_v13 = vand.u32 31, %v352_v11  ;;  %s409_s27 = scalar_lea.sflag [#allocation4], %s897_s26 }
  0x2c   : > { %s269_s20 = scalar_lea.vmem %s1052_s0, %s558_s5  ;;  %s276_s29 = scalar_lea.vmem %s1053_s1, %s558_s5 }
  0x2d   : > { %v947_v14 = vld [vmem:[%s269_s20] sm:$0xff]  ;;  %vm949_vm0 = vcmp.lt.s32.totalorder %v357_v13, 16  ;;  %s422_s16 = sadd.s32 %s762_s15, %s564_s24  ;;  %s700_s21 = scalar_lea.hbm %s1055_s3, 48 }
  0x2e   : > { %v953_v16 = vld [vmem:[%s276_s29] sm:$0xff]  ;;  %v376_v17 = vmul.f32 %v947_v14, %v279_v1  ;;  %v291_v22 = vrot.slane %v947_v14, 3  ;;  %v294_v31 = vrot.slane %v947_v14, 6  ;;  %v290_v40 = vrot.slane %v947_v14, 2  ;;  %s423_s9 = scalar_lea.hbm %s1055_s3, %s422_s16 }
  0x2f   : > { %325 = vrot.lane.b32.xlu1 %v282_v3, %s783_s22  ;;  %321 = vrot.lane.b32.xlu0 %v916_v4, %s783_s22  ;;  %v307_v25 = vrot.slane %v953_v16, 3  ;;  %v310_v34 = vrot.slane %v953_v16, 6  ;;  %v289_v41 = vrot.slane %v947_v14, 1  ;;  %v306_v43 = vrot.slane %v953_v16, 2  ;;  %s426_s15 = sshll.u32 %s423_s9, 4  ;;  %s427_s15 = int_to_ptr.hbm [resolvable:$true] %s426_s15 }
  0x30   : > { %329 = vrot.lane.b32.xlu2 %v918_v5, %s783_s22  ;;  %v379_v26 = vmul.f32 %v291_v22, %v282_v3  ;;  %v382_v35 = vmul.f32 %v294_v31, %v285_v7  ;;  %v305_v44 = vrot.slane %v953_v16, 1  ;;  %v378_v45 = vmul.f32 %v290_v40, %v907_v0  ;;  %s694_s5 = sshra.s32 %s427_s15, 4  ;;  %s695_s5 = int_to_ptr.hbm [resolvable:$true] %s694_s5 }
  0x31   : > { %v377_v46 = vmul.f32 %v289_v41, %v916_v4  ;;  %v292_v53 = vrot.slane %v947_v14, 4  ;;  %v293_v54 = vrot.slane %v947_v14, 5  ;;  %v309_v57 = vrot.slane %v953_v16, 5  ;;  %s696_s10 = scalar_lea.hbm %s695_s5, 8  ;;  %p701_p8 = scmp.lt.s32.totalorder %s695_s5, %s1055_s3 }
  0x32   : > { %v308_v58 = vrot.slane %v953_v16, 4  ;;  %p697_p5 = scmp.ne.s32.totalorder %s695_s5, %s696_s10  ;;  %p702_p10 = scmp.lt.s32.totalorder %s700_s21, %s696_s10 }
  0x33   : > { %v380_v59 = vmul.f32 %v292_v53, %v912_v2  ;;  %v381_v60 = vmul.f32 %v293_v54, %v918_v5 }
  0x34   : > { %p698_p6 = pnand %p697_p5, %p872_p9  ;;  %p703_p11 = por %p702_p10, %p701_p8 }
  0x36   : > { %p699_p7 = pneg %p698_p6 }
  0x37   : > { %333 = vrot.lane.b32.xlu1 %v925_v6, %s783_s22  ;;  %331 = vrot.lane.b32.xlu0 %v285_v7, %s783_s22 }
  0x38   : > { %335 = vrot.lane.b32.xlu2 %v279_v1, %s784_s23  ;;  %p704_p13 = pnand %p703_p11, %p699_p7 }
  0x3f   : > { %339 = vrot.lane.b32.xlu1 %v907_v0, %s784_s23  ;;  %337 = vrot.lane.b32.xlu0 %v916_v4, %s784_s23  ;;  %v295_v4 = vrot.slane %v947_v14, 7 }
  0x40   : > { %341 = vrot.lane.b32.xlu2 %v282_v3, %s784_s23 }
  0x47   : > { %345 = vrot.lane.b32.xlu1 %v918_v5, %s784_s23  ;;  %343 = vrot.lane.b32.xlu0 %v912_v2, %s784_s23  ;;  %v311_v5 = vrot.slane %v953_v16, 7 }
  0x48   : > { %347 = vrot.lane.b32.xlu2 %v285_v7, %s784_s23 }
  0x4f   : > { %349 = vrot.lane.b32.xlu0 %v925_v6, %s784_s23  ;;  %s424_s23 = sshll.u32 %s962_s30, 4  ;;  %s425_s23 = int_to_ptr.vmem [resolvable:$true] %s424_s23 }
  0x82   : > { %v935_v8 = vpop.permute.xlu2 %327 }
  0x8a   : > { %v938_v9 = vpop.permute.xlu2 %329 }
  0x92   : > { %v336_v12 = vpop.permute.xlu2 %335 }
  0x99   : > { %v324_v18 = vpop.permute.xlu1 %323  ;;  %v320_v19 = vpop.permute.xlu0 %319 }
  0x9a   : > { %v368_v20 = vsel %vm949_vm0, %v336_v12, %v320_v19  ;;  %v342_v24 = vpop.permute.xlu2 %341 }
  0x9b   : > { %v384_v21 = vmul.f32 %v368_v20, %v953_v16 }
  0x9d   : > { %v392_v23 = vadd.f32 %v384_v21, %v376_v17 }
  0x9f   : > { %400 = vst [vmem:[%s962_s30] sm:$0x1] %v392_v23 }
  0xa1   : > { %v326_v27 = vpop.permute.xlu1 %325  ;;  %v322_v28 = vpop.permute.xlu0 %321 }
  0xa2   : > { %v371_v29 = vsel %vm949_vm0, %v342_v24, %v326_v27  ;;  %v348_v33 = vpop.permute.xlu2 %347 }
  0xa3   : > { %v387_v30 = vmul.f32 %v371_v29, %v307_v25 }
  0xa5   : > { %v395_v32 = vadd.f32 %v387_v30, %v379_v26 }
  0xa7   : > { %403 = vst [vmem:[%s962_s30 + $0x3] sm:$0x1] %v395_v32 }
  0xa9   : > { %v334_v36 = vpop.permute.xlu1 %333  ;;  %v332_v37 = vpop.permute.xlu0 %331 }
  0xaa   : > { %v374_v38 = vsel %vm949_vm0, %v348_v33, %v332_v37 }
  0xab   : > { %v390_v39 = vmul.f32 %v374_v38, %v310_v34 }
  0xad   : > { %v398_v42 = vadd.f32 %v390_v39, %v382_v35 }
  0xaf   : > { %406 = vst [vmem:[%s962_s30 + $0x6] sm:$0x1] %v398_v42 }
  0xb1   : > { %v340_v47 = vpop.permute.xlu1 %339  ;;  %v338_v48 = vpop.permute.xlu0 %337 }
  0xb2   : > { %v370_v49 = vsel %vm949_vm0, %v340_v47, %v324_v18  ;;  %v369_v50 = vsel %vm949_vm0, %v338_v48, %v322_v28 }
  0xb3   : > { %v386_v51 = vmul.f32 %v370_v49, %v306_v43  ;;  %v385_v52 = vmul.f32 %v369_v50, %v305_v44 }
  0xb5   : > { %v394_v55 = vadd.f32 %v386_v51, %v378_v45  ;;  %v393_v56 = vadd.f32 %v385_v52, %v377_v46 }
  0xb7   : > { %402 = vst [vmem:[%s962_s30 + $0x2] sm:$0x1] %v394_v55 }
  0xb8   : > { %401 = vst [vmem:[%s962_s30 + $0x1] sm:$0x1] %v393_v56 }
  0xb9   : > { %v346_v61 = vpop.permute.xlu1 %345  ;;  %v344_v62 = vpop.permute.xlu0 %343 }
  0xba   : > { %v373_v63 = vsel %vm949_vm0, %v346_v61, %v938_v9  ;;  %v372_v0 = vsel %vm949_vm0, %v344_v62, %v935_v8  ;;  %v383_v8 = vmul.f32 %v295_v4, %v925_v6 }
  0xbb   : > { %v389_v1 = vmul.f32 %v373_v63, %v309_v57  ;;  %v388_v3 = vmul.f32 %v372_v0, %v308_v58 }
  0xbd   : > { %v397_v2 = vadd.f32 %v389_v1, %v381_v60  ;;  %v396_v7 = vadd.f32 %v388_v3, %v380_v59 }
  0xbf   : > { %405 = vst [vmem:[%s962_s30 + $0x5] sm:$0x1] %v397_v2 }
  0xc0   : > { %404 = vst [vmem:[%s962_s30 + $0x4] sm:$0x1] %v396_v7 }
  0xc1   : > { %v350_v9 = vpop.permute.xlu0 %349 }
  0xc2   : > { %v375_v10 = vsel %vm949_vm0, %v350_v9, %v334_v36 }
  0xc3   : > { %v391_v11 = vmul.f32 %v375_v10, %v311_v5 }
  0xc5   : > { %v399_v12 = vadd.f32 %v391_v11, %v383_v8 }
  0xc7   : > { %407 = vst [vmem:[%s962_s30 + $0x7] sm:$0x1] %v399_v12 }
  0xc8   : > { %707 = shalt.err (!%p704_p13)
}
  0xc9   : > { %s785_s26 = smov 48   ;;  %s786_s30 = smov 1  }
  0xca   : > { %567 = dma.vmem_to_hbm [thread:$0]  (%p872_p9), %s425_s23, 128, %s427_s15, %s409_s27, %s783_s22, %s785_s26, %s786_s30  }
  0xcb PF: > { %p578_p0 = scmp.ge.s32.totalorder %s778_s19, 2  ;;  %s441_s24 = sand.u32 1, %s750_s12  }
  0xcc   : > { %s442_s16 = scalar_lea.sflag [#allocation4], %s441_s24 }
  0xcd   : > { %p574_p1 = pnand %p578_p0, %p878_p12 }
  0xcf   : > { %p575_p2 = pneg %p574_p1 }
  0xd1   : > { %745 = dma.done.wait (%p575_p2), %s442_s16, 128  }
  0xd2   : > { %747 = vsyncadd (%p575_p2), %s442_s16, 4294967168  ;;  %s19_s19 = sadd.s32 1, %s778_s19   ;;  %s1066_s28 = sld [smem:[#allocation8_spill]] }
  0xd3   : > { %p16_p4 = scmp.ge.s32.totalorder %s19_s19, 6   ;;  %s1067_s22 = sld [smem:[#allocation9_spill]] }
  0xd4   : > { %s1068_s12 = smov %s754_s13  ;;  %s1069_s13 = smov %s758_s14 }
  0xd5   : > { %s1070_s14 = smov %s885_s6  ;;  %s1071_s15 = smov %s770_s17 }
  0xd6   : > { %s1072_s16 = smov %s774_s18  ;;  %18 = sbr.rel (!%p16_p4) target bundleno = 7 (0x7), region = 83 }
  0xd8   : > { %s1073_s17 = smov %s1066_s28 }
  0xd9   : > { %s1074_s18 = smov %s1067_s22 }
  0xdb   :  { %448 = vsyncpa [#allocation3], 1 }
  0xdc   :  { %450 = vsyncpa [#allocation3 + $0x1], 1 }
  0xdd   :  { %451 = vsyncpa [#allocation4], 1 }
  0xde   :  { %453 = vsyncpa [#allocation4 + $0x1], 1 }

</bundles_post_ra>
